<compile_context>
chip_gen: v7x
topology: tpu7x:2x2x1
jax: 0.10.0
libtpu: 0.0.40
codegen_flags: <defaults>
</compile_context>

<pallas_src>
import functools

import jax
import jax.numpy as jnp
from jax import lax
from jax.experimental import pallas as pl
from jax.experimental.pallas import tpu as pltpu


def _focal_kernel(*refs, gamma, ts, s_total, needs_mask, use_alpha):
    if use_alpha:
        logits_ref, target_ref, alpha_ref, out_ref = refs
    else:
        logits_ref, target_ref, out_ref = refs
        alpha_ref = None

    x = logits_ref[0].astype(jnp.float32)          # (C, tS) classes on sublanes
    t = target_ref[0]                              # (1, tS) int32, spatial on lanes
    c = x.shape[0]

    # log_softmax over the class (sublane) axis — per-lane independent.
    m = jnp.max(x, axis=0, keepdims=True)          # (1, tS)
    z = x - m
    lse = jnp.log(jnp.sum(jnp.exp(z), axis=0, keepdims=True))
    logp = z - lse                                 # (C, tS)

    # Gather log p_t (and alpha_t) via a one-hot select on the class axis.
    cls = lax.broadcasted_iota(jnp.int32, (c, ts), 0)
    onehot = (cls == t).astype(jnp.float32)        # (C, tS)
    logpt = jnp.sum(logp * onehot, axis=0, keepdims=True)     # (1, tS)
    pt = jnp.exp(logpt)

    if use_alpha:
        at = jnp.sum(alpha_ref[...] * onehot, axis=0, keepdims=True)
        logpt = logpt * at

    if gamma == 0:
        loss = -logpt
    else:
        g = float(gamma)
        one_minus_pt = 1.0 - pt
        if g.is_integer() and 0 < g <= 8:
            # small integer exponent -> VPU multiplies (avoid EUP log+exp pow)
            f = one_minus_pt
            for _ in range(int(g) - 1):
                f = f * one_minus_pt
        else:
            f = jnp.power(one_minus_pt, g)
        loss = -f * logpt

    if needs_mask:
        # ragged last spatial tile: zero lanes beyond the true extent
        si = pl.program_id(1)
        col = si * ts + lax.broadcasted_iota(jnp.int32, (1, ts), 1)
        loss = jnp.where(col < s_total, loss, 0.0)

    # Per-tile partial sum, written as a full (8, 128) unmasked block
    # (scalar in slot [0, 0], zeros elsewhere); summed in JAX afterwards.
    partial = jnp.sum(loss)
    r = lax.broadcasted_iota(jnp.int32, (8, 128), 0)
    q = lax.broadcasted_iota(jnp.int32, (8, 128), 1)
    blk = jnp.where((r == 0) & (q == 0), partial, 0.0)
    out_ref[...] = blk.reshape(1, 8, 128)


def focal_loss(logits_nchw, target_nhw, *, gamma=0, alpha=None,
               size_average=True, block_bytes=2 * 1024 * 1024):
    """Pallas implementation of FocalLoss.forward for NCHW logits."""
    n, c, h, w = logits_nchw.shape
    s = h * w
    m_rows = n * s

    # Free reshapes of the contiguous NCHW input — no transpose / pad copies.
    logits = logits_nchw.reshape(n, c, s)
    target = target_nhw.reshape(n, 1, s).astype(jnp.int32)

    # Spatial (lane) tile: aim for ~block_bytes per logits block.
    itemsize = jnp.dtype(logits.dtype).itemsize
    ts_target = max(128, (block_bytes // max(1, c * itemsize)) // 128 * 128)
    if s <= ts_target:
        ts = s              # whole spatial extent: full-dim block is always legal
    else:
        ts = ts_target      # multiple of 128; ragged last tile masked in-kernel
    n_s = pl.cdiv(s, ts)
    needs_mask = (n_s * ts != s)

    # alpha handling (mirrors the PyTorch __init__).
    use_alpha = alpha is not None
    if isinstance(alpha, (float, int)):
        alpha_vec = jnp.array([alpha, 1.0 - alpha], dtype=jnp.float32)
    elif isinstance(alpha, (list, tuple)):
        alpha_vec = jnp.array(alpha, dtype=jnp.float32)
    else:
        alpha_vec = jnp.ones((c,), dtype=jnp.float32)
    if alpha_vec.shape[0] < c:
        # clamp-style pad (repeat last weight) rather than zero-padding, which
        # would silently zero the loss for high classes.
        alpha_vec = jnp.concatenate(
            [alpha_vec,
             jnp.full((c - alpha_vec.shape[0],), alpha_vec[-1], jnp.float32)])
    alpha_vec = alpha_vec[:c].reshape(c, 1)

    kernel = functools.partial(_focal_kernel, gamma=gamma, ts=ts, s_total=s,
                               needs_mask=needs_mask, use_alpha=use_alpha)

    in_specs = [
        pl.BlockSpec((1, c, ts), lambda ni, si: (ni, 0, si)),
        pl.BlockSpec((1, 1, ts), lambda ni, si: (ni, 0, si)),
    ]
    args = [logits, target]
    if use_alpha:
        # constant block index -> fetched once, not re-streamed every step
        in_specs.append(pl.BlockSpec((c, 1), lambda ni, si: (0, 0)))
        args.append(alpha_vec)

    partials = pl.pallas_call(
        kernel,
        out_shape=jax.ShapeDtypeStruct((n, n_s * 8, 128), jnp.float32),
        grid_spec=pltpu.PrefetchScalarGridSpec(
            num_scalar_prefetch=0,
            grid=(n, n_s),
            in_specs=in_specs,
            out_specs=pl.BlockSpec((1, 8, 128), lambda ni, si: (ni, si, 0)),
        ),
        compiler_params=pltpu.CompilerParams(
            dimension_semantics=("parallel", "parallel")),
    )(*args)

    total = jnp.sum(partials)      # tiny scalar epilogue in JAX
    if size_average:
        return total / m_rows
    return total


def _reference(logits_nchw, target_nhw, gamma, alpha, size_average):
    n, c, h, w = logits_nchw.shape
    x = jnp.transpose(logits_nchw, (0, 2, 3, 1)).reshape(-1, c)
    t = target_nhw.reshape(-1).astype(jnp.int32)
    logp = jax.nn.log_softmax(x, axis=-1)
    logpt = jnp.take_along_axis(logp, t[:, None], axis=1)[:, 0]
    pt = jnp.exp(logpt)
    if alpha is not None:
        if isinstance(alpha, (float, int)):
            a = jnp.array([alpha, 1.0 - alpha], dtype=jnp.float32)
        else:
            a = jnp.array(alpha, dtype=jnp.float32)
        logpt = logpt * a[t]
    loss = -((1.0 - pt) ** gamma) * logpt
    return loss.mean() if size_average else loss.sum()


if __name__ == "__main__":
    key = jax.random.PRNGKey(0)
    k1, k2 = jax.random.split(key)

    N, C, H, W = 2, 4, 16, 16
    logits = jax.random.normal(k1, (N, C, H, W), dtype=jnp.float32)
    target = jax.random.randint(k2, (N, H, W), 0, C, dtype=jnp.int32)

    gamma = 2.0
    alpha = [0.25, 0.25, 0.25, 0.25]

    out = focal_loss(logits, target, gamma=gamma, alpha=alpha,
                     size_average=True)
    out = jax.block_until_ready(out)

    ref = _reference(logits, target, gamma, alpha, True)
    assert jnp.allclose(out, ref, rtol=1e-5, atol=1e-6), (out, ref)

    # also exercise the no-alpha / gamma=0 path (plain NLL) for safety
    out2 = jax.block_until_ready(
        focal_loss(logits, target, gamma=0, alpha=None, size_average=True))
    ref2 = _reference(logits, target, 0, None, True)
    assert jnp.allclose(out2, ref2, rtol=1e-5, atol=1e-6), (out2, ref2)

    print("KERNEL_OK")
</pallas_src>

<mosaic_0001>
module attributes {stable_mosaic.version = 11 : i64} {
  func.func @_focal_kernel(%arg0: i32, %arg1: i32, %arg2: memref<1x4x256xf32, #tpu.memory_space<vmem>>, %arg3: memref<1x1x256xi32, #tpu.memory_space<vmem>>, %arg4: memref<4x1xf32, #tpu.memory_space<vmem>>, %arg5: memref<1x8x128xf32, #tpu.memory_space<vmem>>) attributes {dimension_semantics = [#tpu.dimension_semantics<parallel>, #tpu.dimension_semantics<parallel>], iteration_bounds = array<i64: 2, 1>, scalar_prefetch = 0 : i64, scratch_operands = 0 : i64, tpu.core_type = #tpu.core_type<tc>, window_params = [{transform_indices = @transform_0, window_bounds = array<i64: 1, 4, 256>}, {transform_indices = @transform_1, window_bounds = array<i64: 1, 1, 256>}, {pipeline_mode = #tpu.pipeline_mode<synchronous>, transform_indices = @transform_2, window_bounds = array<i64: 4, 1>}, {transform_indices = @transform_3, window_bounds = array<i64: 1, 8, 128>}]} {
    %c0 = arith.constant 0 : index
    %c0_0 = arith.constant 0 : index
    %c0_1 = arith.constant 0 : index
    %0 = vector.load %arg2[%c0, %c0_0, %c0_1] : memref<1x4x256xf32, #tpu.memory_space<vmem>>, vector<1x4x256xf32>
    %1 = vector.shape_cast %0 : vector<1x4x256xf32> to vector<4x256xf32>
    %c0_2 = arith.constant 0 : index
    %c0_3 = arith.constant 0 : index
    %c0_4 = arith.constant 0 : index
    %2 = vector.load %arg3[%c0_2, %c0_3, %c0_4] : memref<1x1x256xi32, #tpu.memory_space<vmem>>, vector<1x1x256xi32>
    %3 = vector.shape_cast %2 : vector<1x1x256xi32> to vector<1x256xi32>
    %cst = arith.constant dense<0xFF800000> : vector<256xf32>
    %4 = vector.multi_reduction <maximumf>, %1, %cst [0] : vector<4x256xf32> to vector<256xf32>
    %5 = vector.shape_cast %4 : vector<256xf32> to vector<1x256xf32>
    %6 = vector.broadcast %5 : vector<1x256xf32> to vector<4x256xf32>
    %7 = arith.subf %1, %6 : vector<4x256xf32>
    %8 = math.exp %7 : vector<4x256xf32>
    %cst_5 = arith.constant dense<0.000000e+00> : vector<256xf32>
    %9 = vector.multi_reduction <add>, %8, %cst_5 [0] : vector<4x256xf32> to vector<256xf32>
    %10 = vector.shape_cast %9 : vector<256xf32> to vector<1x256xf32>
    %11 = math.log %10 : vector<1x256xf32>
    %12 = vector.broadcast %11 : vector<1x256xf32> to vector<4x256xf32>
    %13 = arith.subf %7, %12 : vector<4x256xf32>
    %14 = tpu.iota {dimensions = array<i32: 0>} : vector<4x256xi32>
    %15 = vector.broadcast %3 : vector<1x256xi32> to vector<4x256xi32>
    %16 = arith.cmpi eq, %14, %15 : vector<4x256xi32>
    %17 = arith.extui %16 : vector<4x256xi1> to vector<4x256xi32>
    %18 = arith.sitofp %17 : vector<4x256xi32> to vector<4x256xf32>
    %19 = arith.mulf %13, %18 : vector<4x256xf32>
    %cst_6 = arith.constant dense<0.000000e+00> : vector<256xf32>
    %20 = vector.multi_reduction <add>, %19, %cst_6 [0] : vector<4x256xf32> to vector<256xf32>
    %21 = vector.shape_cast %20 : vector<256xf32> to vector<1x256xf32>
    %22 = math.exp %21 : vector<1x256xf32>
    %c0_7 = arith.constant 0 : index
    %c0_8 = arith.constant 0 : index
    %23 = vector.load %arg4[%c0_7, %c0_8] : memref<4x1xf32, #tpu.memory_space<vmem>>, vector<4x1xf32>
    %24 = vector.broadcast %23 : vector<4x1xf32> to vector<4x256xf32>
    %25 = arith.mulf %24, %18 : vector<4x256xf32>
    %cst_9 = arith.constant dense<0.000000e+00> : vector<256xf32>
    %26 = vector.multi_reduction <add>, %25, %cst_9 [0] : vector<4x256xf32> to vector<256xf32>
    %27 = vector.shape_cast %26 : vector<256xf32> to vector<1x256xf32>
    %28 = arith.mulf %21, %27 : vector<1x256xf32>
    %cst_10 = arith.constant 1.000000e+00 : f32
    %29 = vector.broadcast %cst_10 : f32 to vector<1x256xf32>
    %30 = arith.subf %29, %22 : vector<1x256xf32>
    %31 = arith.mulf %30, %30 : vector<1x256xf32>
    %cst_11 = arith.constant 0.000000e+00 : f32
    %32 = vector.broadcast %cst_11 : f32 to vector<1x256xf32>
    %33 = arith.subf %32, %31 : vector<1x256xf32>
    %34 = arith.mulf %33, %28 : vector<1x256xf32>
    %35 = vector.shape_cast %34 : vector<1x256xf32> to vector<1x1x256xf32>
    %cst_12 = arith.constant dense<0.000000e+00> : vector<1xf32>
    %36 = vector.multi_reduction <add>, %35, %cst_12 [1, 2] : vector<1x1x256xf32> to vector<1xf32>
    %37 = vector.shape_cast %36 : vector<1xf32> to vector<1x1x1xf32>
    %38 = vector.extract %37[0, 0, 0] : f32 from vector<1x1x1xf32>
    %39 = tpu.iota {dimensions = array<i32: 0>} : vector<8x128xi32>
    %40 = tpu.iota {dimensions = array<i32: 1>} : vector<8x128xi32>
    %c0_i32 = arith.constant 0 : i32
    %41 = vector.broadcast %c0_i32 : i32 to vector<8x128xi32>
    %42 = arith.cmpi eq, %39, %41 : vector<8x128xi32>
    %c0_i32_13 = arith.constant 0 : i32
    %43 = vector.broadcast %c0_i32_13 : i32 to vector<8x128xi32>
    %44 = arith.cmpi eq, %40, %43 : vector<8x128xi32>
    %45 = arith.andi %42, %44 : vector<8x128xi1>
    %cst_14 = arith.constant 0.000000e+00 : f32
    %46 = vector.broadcast %38 : f32 to vector<8x128xf32>
    %47 = vector.broadcast %cst_14 : f32 to vector<8x128xf32>
    %48 = arith.select %45, %46, %47 : vector<8x128xi1>, vector<8x128xf32>
    %49 = vector.shape_cast %48 : vector<8x128xf32> to vector<1x8x128xf32>
    %c0_15 = arith.constant 0 : index
    %c0_16 = arith.constant 0 : index
    %c0_17 = arith.constant 0 : index
    %50 = vector.load %arg5[%c0_15, %c0_16, %c0_17] : memref<1x8x128xf32, #tpu.memory_space<vmem>>, vector<1x8x128xf32>
    tpu.vector_store %arg5[%c0_15, %c0_16, %c0_17], %49 {strides = array<i32>} : memref<1x8x128xf32, #tpu.memory_space<vmem>>, vector<1x8x128xf32>,
    return
  }
  func.func @transform_0(%arg0: i32, %arg1: i32) -> (i32, i32, i32) {
    %c0_i32 = arith.constant 0 : i32
    %c0_i32_0 = arith.constant 0 : i32
    return %arg0, %c0_i32, %arg1 : i32, i32, i32
  }
  func.func @transform_1(%arg0: i32, %arg1: i32) -> (i32, i32, i32) {
    %c0_i32 = arith.constant 0 : i32
    %c0_i32_0 = arith.constant 0 : i32
    return %arg0, %c0_i32, %arg1 : i32, i32, i32
  }
  func.func @transform_2(%arg0: i32, %arg1: i32) -> (i32, i32) {
    %c0_i32 = arith.constant 0 : i32
    %c0_i32_0 = arith.constant 0 : i32
    %c0_i32_1 = arith.constant 0 : i32
    return %c0_i32, %c0_i32_0 : i32, i32
  }
  func.func @transform_3(%arg0: i32, %arg1: i32) -> (i32, i32, i32) {
    %c0_i32 = arith.constant 0 : i32
    %c0_i32_0 = arith.constant 0 : i32
    return %arg0, %arg1, %c0_i32 : i32, i32, i32
  }
}

</mosaic_0001>

<bundles_post_ra>
// kernel: tpu_custom_call.1
= control target key start
LH: loop header
LB: loop body
LE: loop exit
PB: predicated region body
PF: predicated region fallthrough
CT: control target
= control target key end

     0   :  { %8 = vsyncpa [#allocation3], 0  ;;  %s934_s0 = inlined_call_operand.hbm [shape: f32[2,4,256], index: 0, kind: input, shape index: {}]   ;;  %s935_s1 = inlined_call_operand.vmem [shape: s32[2,1,256], index: 1, kind: input, shape index: {}]   ;;  %s936_s2 = inlined_call_operand.vmem [shape: f32[4,1], index: 2, kind: input, shape index: {}]   ;;  %s937_s3 = inlined_call_operand.hbm [shape: f32[2,8,128], index: 3, kind: output, shape index: {}]  }
   0x1   :  { %10 = vsyncpa [#allocation3 + $0x1], 0 }
   0x2   :  { %11 = vsyncpa [#allocation4], 0 }
   0x3   :  { %13 = vsyncpa [#allocation4 + $0x1], 0  ;;  %s733_s12 = smov 0   ;;  %s735_s13 = smov 0  }
   0x4   :  { %s737_s14 = smov 0   ;;  %s739_s15 = smov 0  }
   0x5   :  { %s741_s16 = smov 0   ;;  %s743_s17 = smov 0  }
   0x6 LB: > { %s499_s18 = sadd.s32 4294967295, %s707_s17   ;;  %s500_s19 = sadd.s32 4294967294, %s707_s17   ;;  %s707_s17 = sphi %s743_s17, %s19_s17   ;;  %s703_s16 = sphi %s741_s16, %s953_s16   ;;  %s699_s15 = sphi %s739_s15, %s952_s15   ;;  %s695_s14 = sphi %s737_s14, %s951_s14   ;;  %s691_s13 = sphi %s735_s13, %s950_s13   ;;  %s687_s12 = sphi %s733_s12, %s949_s12  }
   0x7   : > { %s31_s20 = sadd.s32 1, %s703_s16  ;;  %s40_s21 = sadd.s32 1, %s695_s14 }
   0x8   : > { %p33_p0 = scmp.ge.s32.totalorder %s31_s20, 2  ;;  %p47_p1 = scmp.ne.s32.totalorder %s695_s14, %s691_s13 }
   0x9   : > { %p48_p2 = scmp.eq.s32.totalorder %s707_s17, 0  ;;  %p53_p3 = scmp.ne.s32.totalorder %s691_s13, %s687_s12 }
   0xa   : > { %s955_s20 = smov (%p33_p0, %s31_s20), 0  ;;  %p54_p5 = scmp.eq.s32.totalorder %s499_s18, 0 }
   0xb   : > { %p774_p4 = por %p48_p2, %p47_p1  ;;  %s35_s23 = ssub.s32 %s703_s16, %s955_s20 }
   0xc   : > { %p128_p6 = scmp.eq.s32.totalorder %s499_s18, 1  ;;  %p38_p7 = scmp.eq.s32.totalorder %s35_s23, 0 }
   0xd   : > { %p780_p8 = por %p54_p5, %p53_p3  ;;  %p134_p10 = scmp.eq.s32.totalorder %s500_s19, 1 }
   0xe   : > { %p784_p9 = por %p128_p6, %p47_p1  ;;  %p531_p13 = scmp.lt.s32.totalorder %s707_s17, 2 }
   0xf   : > { %s789_s26 = scalar_select %p38_p7, %s695_s14, %s40_s21  }
  0x10   : > { %s941_s25 = scalar_select %p784_p9, 1, 0 }
  0x11   : > { %p791_p11 = por %p134_p10, %p53_p3  ;;  %s157_s28 = sand.u32 1, %s695_s14  }
  0x12   : > { %s503_s29 = sshll.u32 %s157_s28, 3  ;;  %s516_s30 = sshll.u32 %s703_s16, 7 }
  0x13   : > { %s942_s27 = scalar_select %p791_p11, 1, 0 }
  0x14   : > { %s802_s6 = scalar_lea.hbm %s934_s0, %s516_s30  ;;  %s161_s7 = scalar_lea.vmem [#allocation2], %s503_s29 }
  0x15   : > { %s171_s8 = sshll.u32 %s161_s7, 4  ;;  %p808_p0 = pnand %p531_p13, %p774_p4  ;;  %s804_s8 = int_to_ptr.vmem [resolvable:$true] %s171_s8 }
  0x16   : > { %s158_s10 = scalar_lea.sflag [#allocation3], %s157_s28  ;;  %s595_s11 = scalar_lea.hbm %s802_s6, 128 }
  0x17   : > { %p596_p3 = scmp.ne.s32.totalorder %s802_s6, %s595_s11  ;;  %p597_p5 = pneg %p808_p0 }
  0x18   : > { %s600_s21 = scalar_lea.hbm %s934_s0, 256  ;;  %p601_p4 = scmp.lt.u32.totalorder %s802_s6, %s934_s0 }
  0x19   : > { %p598_p6 = pnand %p597_p5, %p596_p3  ;;  %p602_p10 = scmp.lt.u32.totalorder %s600_s21, %s595_s11 }
  0x1a   : > { %p604_p12 = scmp.lt.u32.totalorder %s595_s11, %s802_s6 }
  0x1b   : > { %p599_p7 = pneg %p598_p6  ;;  %p603_p13 = por %p602_p10, %p601_p4 }
  0x1d   : > { %p605_p1 = por %p604_p12, %p603_p13 }
  0x1f   : > { %p606_p2 = pnand %p605_p1, %p599_p7 }
  0x21   : > { %609 = shalt.err (!%p606_p2)
}
  0x22   : > { %s610_s28 = scalar_lea.vmem %s804_s8, 128  ;;  %s709_s29 = smov [#allocation2]  }
  0x23   : > { %p611_p3 = scmp.ne.s32.totalorder %s804_s8, %s610_s28  ;;  %s615_s30 = sshll.u32 %s709_s29, 4  ;;  %s616_s30 = int_to_ptr.vmem [resolvable:$false] %s615_s30 }
  0x24   : > { %s617_s4 = scalar_lea.vmem %s616_s30, 256  ;;  %p618_p9 = scmp.lt.s32.totalorder %s804_s8, %s616_s30 }
  0x25   : > { %p613_p6 = pnand %p611_p3, %p597_p5  ;;  %p619_p4 = scmp.lt.s32.totalorder %s617_s4, %s610_s28 }
  0x27   : > { %p614_p11 = pneg %p613_p6  ;;  %p620_p10 = por %p619_p4, %p618_p9 }
  0x29   : > { %p621_p12 = pnand %p620_p10, %p614_p11 }
  0x2b   : > { %624 = shalt.err (!%p621_p12)
}
  0x2c   : > { %526 = dma.hbm_to_vmem [thread:$0]  (!%p808_p0), %s802_s6, 128, %s804_s8, %s158_s10  }
  0x2d   : > { %p944_p1 = scmp.lt.s32.totalorder %s707_s17, 3  ;;  %p945_p2 = scmp.ge.s32.totalorder %s707_s17, 1 }
  0x2f   : > { %p189_p5 = pnand %p945_p2, %p944_p1 }
  0x30   : > { %s844_s5 = sand.u32 (!%p189_p5), 1, %s691_s13  }
  0x31   : > { %192 = sbr.rel (%p189_p5) target bundleno = 429 (0x1ad), region = 32  ;;  %s507_s7 = sshll.u32 (!%p189_p5), %s844_s5, 3 }
  0x32   : > { %s195_s11 = scalar_lea.sflag (!%p189_p5), [#allocation3], %s844_s5  ;;  %s198_s9 = scalar_lea.vmem (!%p189_p5), [#allocation2], %s507_s7 }
  0x38   : > { %678 = dma.done.wait (%p780_p8), %s195_s11, 128  }
  0x39   : > { %680 = vsyncadd (%p780_p8), %s195_s11, 4294967168  ;;  %v710_v0 = vmov 0   ;;  %vm244_vm0 = vcmask 1043456   ;;  %v334_v1 = vld [vmem:[%s936_s2] sm:$0xf]  ;;  %p231_p8 = scmp.lt.s32.totalorder %s699_s15, 1  ;;  %v292_v37 = vlaneseq }
  0x3a   : > { %583 = vset.pattern.permute.xlu0 %v710_v0  ;;  %v239_v2 = vld [vmem:[%s198_s9] sm:$0xff]  ;;  %v711_v49 = vmov 0.0   ;;  %vm366_vm3 = vcmask 1040384   ;;  %s513_s22 = sshll.u32 %s699_s15, 7  ;;  %s228_s23 = scalar_lea.vmem [#allocation5], %s507_s7 }
  0x3b   : > { %337 = vperm.xlu0 %583, %v334_v1   ;;  %v242_v3 = vcombine.high %v239_v2, %v239_v2  ;;  %v245_v4 = vsel %vm244_vm0, %v239_v2, -inf  ;;  %s232_s24 = scalar_select %p231_p8, %s699_s15, 1  ;;  %v864_v38 = vshrl.u32 %v292_v37, 7 }
  0x3c   : > { %v246_v5 = vrot.slane %v245_v4, 4  ;;  %s402_s28 = sshll.u32 %s228_s23, 4  ;;  %s885_s11 = scalar_lea.hbm %s937_s3, %s513_s22  ;;  %s887_s28 = int_to_ptr.vmem [resolvable:$true] %s402_s28 }
  0x3d   : > { %v252_v6 = vsel %vm244_vm0, %v242_v3, -inf  ;;  %s509_s10 = sshll.u32 %s232_s24, 1  ;;  %v296_v39 = vsub.s32 0, %v864_v38  ;;  %v300_v40 = vsub.s32 1, %v864_v38  ;;  %vm381_vm4 = vcmp.eq.s32.totalorder %v864_v38, 0  ;;  %s388_s9 = scalar_lea.sflag [#allocation4], %s844_s5 }
  0x3e   : > { %v247_v7 = vmax.f32 %v245_v4, %v246_v5  ;;  %v253_v8 = vrot.slane %v252_v6, 4  ;;  %s237_s21 = scalar_lea.vmem %s935_s1, %s509_s10  ;;  %s625_s15 = scalar_lea.vmem %s887_s28, 128 }
  0x3f   : > { %v240_v41 = vld [vmem:[%s237_s21] sm:$0x3]  ;;  %p626_p9 = scmp.ne.s32.totalorder %s887_s28, %s625_s15  ;;  %p946_p11 = scmp.ne.s32.totalorder %s941_s25, 0 }
  0x40   : > { %v248_v9 = vrot.slane %v247_v7, 2  ;;  %v254_v10 = vmax.f32 %v252_v6, %v253_v8  ;;  %v297_v44 = vrot.slane %v240_v41, %v296_v39  ;;  %v301_v45 = vrot.slane %v240_v41, %v300_v40  ;;  %s712_s7 = smov [#allocation5]  }
  0x41   : > { %p627_p0 = pnand %p626_p9, %p946_p11  ;;  %s629_s6 = sshll.u32 %s712_s7, 4  ;;  %s630_s6 = int_to_ptr.vmem [resolvable:$false] %s629_s6 }
  0x42   : > { %v249_v11 = vmax.f32 %v247_v7, %v248_v9  ;;  %v255_v12 = vrot.slane %v254_v10, 2  ;;  %vm302_vm1 = vcmp.eq.s32.totalorder %v864_v38, %v297_v44  ;;  %vm303_vm2 = vcmp.eq.s32.totalorder %v864_v38, %v301_v45  ;;  %s631_s8 = scalar_lea.vmem %s630_s6, 256  ;;  %p632_p13 = scmp.lt.s32.totalorder %s887_s28, %s630_s6 }
  0x43   : > { %v510_v50 = vsel %vm302_vm1, 1.0, %v711_v49  ;;  %v511_v51 = vsel %vm303_vm2, 1.0, %v711_v49  ;;  %v380_v49 = vand.u32 127, %v292_v37  ;;  %p628_p7 = pneg %p627_p0  ;;  %p633_p3 = scmp.lt.s32.totalorder %s631_s8, %s625_s15 }
  0x44   : > { %v250_v13 = vrot.slane %v249_v11, 1  ;;  %v256_v14 = vmax.f32 %v254_v10, %v255_v12  ;;  %v310_v53 = vcombine.low %v510_v50, %v511_v51 }
  0x45   : > { %vm382_vm5 = vcmp.eq.s32.totalorder %v380_v49, 0  ;;  %p634_p6 = por %p633_p3, %p632_p13 }
  0x46   : > { %v251_v15 = vmax.f32 %v249_v11, %v250_v13  ;;  %v257_v16 = vrot.slane %v256_v14, 1  ;;  %vm383_vm6 = vmand %vm381_vm4, %vm382_vm5 }
  0x47   : > { %p635_p4 = pnand %p634_p6, %p628_p7 }
  0x48   : > { %v258_v17 = vmax.f32 %v256_v14, %v257_v16 }
  0x4a   : > { %v261_v18 = vcombine.low %v251_v15, %v258_v17 }
  0x4c   : > { %v263_v19 = vsub.f32 %v239_v2, %v261_v18 }
  0x4e   : > { %v264_v20 = vmul.f32 1.442695, %v263_v19 }
  0x50   : > { %585 = vpow2.f32 %v264_v20 }
  0x5a   : > { %v586_v21 = vpop.eup %585 }
  0x5b   : > { %v267_v22 = vcombine.high %v586_v21, %v586_v21  ;;  %v269_v23 = vsel %vm244_vm0, %v586_v21, 0.0 }
  0x5c   : > { %v270_v24 = vrot.slane %v269_v23, 4 }
  0x5d   : > { %v276_v25 = vsel %vm244_vm0, %v267_v22, 0.0 }
  0x5e   : > { %v271_v26 = vadd.f32 %v270_v24, %v269_v23  ;;  %v277_v27 = vrot.slane %v276_v25, 4 }
  0x60   : > { %v278_v28 = vadd.f32 %v277_v27, %v276_v25  ;;  %v272_v29 = vrot.slane %v271_v26, 2 }
  0x62   : > { %v279_v30 = vrot.slane %v278_v28, 2  ;;  %v273_v31 = vadd.f32 %v272_v29, %v271_v26 }
  0x64   : > { %v280_v32 = vadd.f32 %v279_v30, %v278_v28  ;;  %v274_v33 = vrot.slane %v273_v31, 1 }
  0x66   : > { %v281_v34 = vrot.slane %v280_v32, 1  ;;  %v275_v35 = vadd.f32 %v274_v33, %v273_v31 }
  0x68   : > { %v282_v36 = vadd.f32 %v281_v34, %v280_v32  ;;  %587 = vlog2.f32 %v275_v35 }
  0x6a   : > { %589 = vlog2.f32 %v282_v36 }
  0x72   : > { %v588_v42 = vpop.eup %587 }
  0x73   : > { %v284_v46 = vmul.f32 0.6931472, %v588_v42 }
  0x74   : > { %v590_v43 = vpop.eup %589 }
  0x75   : > { %v286_v47 = vmul.f32 0.6931472, %v590_v43 }
  0x77   : > { %v289_v48 = vcombine.low %v284_v46, %v286_v47 }
  0x79   : > { %v291_v52 = vsub.f32 %v263_v19, %v289_v48 }
  0x7b   : > { %v312_v54 = vmul.f32 %v310_v53, %v291_v52 }
  0x7d   : > { %v314_v55 = vcombine.high %v312_v54, %v312_v54  ;;  %v316_v56 = vsel %vm244_vm0, %v312_v54, 0.0 }
  0x7e   : > { %v317_v58 = vrot.slane %v316_v56, 4 }
  0x7f   : > { %v323_v57 = vsel %vm244_vm0, %v314_v55, 0.0 }
  0x80   : > { %v324_v59 = vrot.slane %v323_v57, 4  ;;  %v318_v60 = vadd.f32 %v317_v58, %v316_v56 }
  0x82   : > { %v325_v61 = vadd.f32 %v324_v59, %v323_v57  ;;  %v319_v62 = vrot.slane %v318_v60, 2 }
  0x84   : > { %v326_v63 = vrot.slane %v325_v61, 2  ;;  %v320_v0 = vadd.f32 %v319_v62, %v318_v60 }
  0x86   : > { %v327_v1 = vadd.f32 %v326_v63, %v325_v61  ;;  %v321_v2 = vrot.slane %v320_v0, 1 }
  0x88   : > { %v328_v3 = vrot.slane %v327_v1, 1  ;;  %v322_v4 = vadd.f32 %v321_v2, %v320_v0 }
  0x8a   : > { %v329_v5 = vadd.f32 %v328_v3, %v327_v1  ;;  %v330_v6 = vmul.f32 1.442695, %v322_v4 }
  0x8c   : > { %v332_v7 = vmul.f32 1.442695, %v329_v5  ;;  %591 = vpow2.f32 %v330_v6 }
  0x8e   : > { %593 = vpow2.f32 %v332_v7 }
  0x96   : > { %v592_v11 = vpop.eup %591 }
  0x97   : > { %v358_v19 = vsub.f32 1.0, %v592_v11 }
  0x98   : > { %v594_v12 = vpop.eup %593 }
  0x99   : > { %v359_v20 = vsub.f32 1.0, %v594_v12  ;;  %v360_v25 = vmul.f32 %v358_v19, %v358_v19 }
  0x9b   : > { %v361_v26 = vmul.f32 %v359_v20, %v359_v20  ;;  %v362_v31 = vsub.f32 0.0, %v360_v25 }
  0x9d   : > { %v363_v32 = vsub.f32 0.0, %v361_v26 }
  0xba   : > { %v338_v8 = vpop.permute.xlu0 %337 }
  0xbb   : > { %v340_v9 = vmul.f32 %v510_v50, %v338_v8  ;;  %v341_v10 = vmul.f32 %v511_v51, %v338_v8 }
  0xbd   : > { %v342_v13 = vsel %vm244_vm0, %v340_v9, 0.0  ;;  %v349_v14 = vsel %vm244_vm0, %v341_v10, 0.0 }
  0xbe   : > { %v343_v15 = vrot.slane %v342_v13, 4  ;;  %v350_v16 = vrot.slane %v349_v14, 4 }
  0xc0   : > { %v344_v17 = vadd.f32 %v343_v15, %v342_v13  ;;  %v351_v18 = vadd.f32 %v350_v16, %v349_v14 }
  0xc2   : > { %v345_v21 = vrot.slane %v344_v17, 2  ;;  %v352_v22 = vrot.slane %v351_v18, 2 }
  0xc4   : > { %v346_v23 = vadd.f32 %v345_v21, %v344_v17  ;;  %v353_v24 = vadd.f32 %v352_v22, %v351_v18 }
  0xc6   : > { %v347_v27 = vrot.slane %v346_v23, 1  ;;  %v354_v28 = vrot.slane %v353_v24, 1 }
  0xc8   : > { %v348_v29 = vadd.f32 %v347_v27, %v346_v23  ;;  %v355_v30 = vadd.f32 %v354_v28, %v353_v24 }
  0xca   : > { %v356_v33 = vmul.f32 %v348_v29, %v322_v4  ;;  %v357_v34 = vmul.f32 %v355_v30, %v329_v5 }
  0xcc   : > { %v364_v35 = vmul.f32 %v362_v31, %v356_v33  ;;  %v365_v36 = vmul.f32 %v363_v32, %v357_v34 }
  0xce   : > { %v367_v39 = vsel %vm366_vm3, %v364_v35, 0.0  ;;  %v368_v40 = vsel %vm366_vm3, %v365_v36, 0.0 }
  0xcf   : > { %v369_v41 = vadd.f32 %v368_v40, %v367_v39 }
  0xd1   : > { %370 = vadd.xlane.f32.xlu0 %v369_v41 }
 0x15e   : > { %v371_v42 = vpop.xlane.xlu0 %370 }
 0x15f   : > { %v372_v43 = vrot.slane %v371_v42, 4 }
 0x161   : > { %v373_v44 = vadd.f32 %v372_v43, %v371_v42 }
 0x163   : > { %v374_v45 = vrot.slane %v373_v44, 2 }
 0x165   : > { %v375_v46 = vadd.f32 %v374_v45, %v373_v44 }
 0x167   : > { %v376_v47 = vrot.slane %v375_v46, 1 }
 0x169   : > { %v377_v48 = vadd.f32 %v376_v47, %v375_v46 }
 0x16b   : > { %517 = vpush %v377_v48 }
 0x19c   : > { %s518_s29 = spop %517 }
 0x19d   : > { %v384_v50 = vstv %s518_s29 }
 0x19e   : > { %v385_v37 = vsel %vm383_vm6, %v384_v50, 0.0 }
 0x19f   : > { %386 = vst [vmem:[%s228_s23] sm:$0xff] %v385_v37 }
 0x1a0   : > { %638 = shalt.err (!%p635_p4)
}
 0x1a1   : > { %s639_s5 = scalar_lea.hbm %s885_s11, 128  ;;  %s643_s18 = scalar_lea.hbm %s937_s3, 256 }
 0x1a2   : > { %p640_p10 = scmp.ne.s32.totalorder %s885_s11, %s639_s5  ;;  %p644_p2 = scmp.lt.u32.totalorder %s885_s11, %s937_s3 }
 0x1a3   : > { %p645_p5 = scmp.lt.u32.totalorder %s643_s18, %s639_s5  ;;  %p647_p9 = scmp.lt.u32.totalorder %s639_s5, %s885_s11 }
 0x1a4   : > { %p641_p12 = pnand %p640_p10, %p946_p11 }
 0x1a5   : > { %p646_p8 = por %p645_p5, %p644_p2 }
 0x1a6   : > { %p642_p1 = pneg %p641_p12 }
 0x1a7   : > { %p648_p0 = por %p647_p9, %p646_p8 }
 0x1a9   : > { %p649_p7 = pnand %p648_p0, %p642_p1 }
 0x1ab   : > { %652 = shalt.err (!%p649_p7)
}
 0x1ac   : > { %521 = dma.vmem_to_hbm [thread:$0]  (%p946_p11), %s887_s28, 128, %s885_s11, %s388_s9  }
 0x1ad PF: > { %s414_s22 = sand.u32 1, %s687_s12   ;;  %p947_p13 = scmp.ne.s32.totalorder %s942_s27, 0 }
 0x1ae   : > { %p948_p3 = scmp.ge.s32.totalorder %s707_s17, 2  ;;  %s415_s23 = scalar_lea.sflag [#allocation4], %s414_s22 }
 0x1b0   : > { %p528_p6 = pnand %p948_p3, %p947_p13 }
 0x1b2   : > { %682 = dma.done.wait (!%p528_p6), %s415_s23, 128  }
 0x1b3   : > { %684 = vsyncadd (!%p528_p6), %s415_s23, 4294967168  ;;  %s19_s17 = sadd.s32 1, %s707_s17   ;;  %s949_s12 = smov %s691_s13 }
 0x1b4   : > { %p16_p4 = scmp.ge.s32.totalorder %s19_s17, 4   ;;  %s950_s13 = smov %s695_s14 }
 0x1b5   : > { %s951_s14 = smov %s789_s26  ;;  %s952_s15 = smov %s703_s16 }
 0x1b6   : > { %s953_s16 = smov %s955_s20  ;;  %18 = sbr.rel (!%p16_p4) target bundleno = 6 (0x6), region = 80 }
 0x1bd   :  { %420 = vsyncpa [#allocation3], 1 }
 0x1be   :  { %422 = vsyncpa [#allocation3 + $0x1], 1 }
 0x1bf   :  { %423 = vsyncpa [#allocation4], 1 }
 0x1c0   :  { %425 = vsyncpa [#allocation4 + $0x1], 1 }

</bundles_post_ra>
